<compile_context>
chip_gen: v5e
topology: v5e:2x2
jax: 0.10.0
libtpu: 0.0.40
codegen_flags: <defaults>
</compile_context>

<pallas_src>
import functools

import jax
import jax.numpy as jnp
from jax.experimental import pallas as pl
from jax.experimental.pallas import tpu as pltpu

LANE = 128  # lane-padded width of the hidden (10) dim inside the kernel


def _round_up(n, m):
    return ((n + m - 1) // m) * m


def _mlp_kernel(x_ref, w_ref, b_ref, o_ref, *, d_in, w2_row, d_out,
                compute_dtype):
    # Weight slab row layout (lane-padded to 128 cols, dtype=compute_dtype):
    #   rows [0      : d_in       ] : W1  (cols >= hidden are zero)
    #   rows [w2_row : w2_row+128 ] : W2  (rows >= hidden, cols >= d_out zero)
    # Bias slab (f32, [2, 128]): row 0 = b1 (padded), row 1 = b2 (padded).
    x = x_ref[...].astype(compute_dtype)                    # [TB, D_in]
    w1 = w_ref[0:d_in, :]                                   # [D_in, 128]
    w2 = w_ref[w2_row:w2_row + LANE, :]                     # [128, 128]
    b1 = b_ref[0:1, :]                                      # [1, 128] f32
    b2 = b_ref[1:2, :]                                      # [1, 128] f32

    h = jnp.dot(x, w1, preferred_element_type=jnp.float32) + b1   # [TB,128] f32
    h = jnp.maximum(h, 0.0)                                        # ReLU
    y = jnp.dot(h.astype(compute_dtype), w2,
                preferred_element_type=jnp.float32) + b2           # [TB,128] f32
    o_ref[...] = y[:, :d_out].astype(o_ref.dtype)                  # narrow store


def pack_params(w1, b1, w2, b2, compute_dtype=jnp.float32):
    """Pack params into a lane-dense weight slab (compute_dtype) + f32 bias slab.

    w1: [D_in, H], b1: [1, H] or [H], w2: [H, D_out], b2: [1, D_out] or [D_out].
    Returns (w_slab, b_slab, d_out, w2_row).
    """
    d_in, h = w1.shape
    d_out = w2.shape[1]
    assert h <= LANE and d_out <= LANE, "hidden/output must fit in 128 lanes"
    w2_row = _round_up(d_in, 8)          # keep the W2 block sublane-aligned
    n_rows = w2_row + LANE
    w_slab = jnp.zeros((n_rows, LANE), compute_dtype)
    w_slab = w_slab.at[0:d_in, 0:h].set(w1.astype(compute_dtype))
    w_slab = w_slab.at[w2_row:w2_row + h, 0:d_out].set(w2.astype(compute_dtype))
    b_slab = jnp.zeros((2, LANE), jnp.float32)
    b_slab = b_slab.at[0, 0:h].set(jnp.reshape(b1, (-1,)).astype(jnp.float32))
    b_slab = b_slab.at[1, 0:d_out].set(jnp.reshape(b2, (-1,)).astype(jnp.float32))
    return w_slab, b_slab, d_out, w2_row


def _choose_batch_tile(batch, block_rows, min_tiles):
    """Tile of >=8 rows, <=block_rows, minimal tail waste, >=min_tiles steps."""
    n_target = max(pl.cdiv(batch, block_rows), min_tiles)
    tb = min(_round_up(pl.cdiv(batch, n_target), 8), _round_up(block_rows, 8))
    tb = max(tb, 8)
    return tb, pl.cdiv(batch, tb)


def regression_model_forward(x, w1, b1, w2, b2, *, block_rows=2048,
                             compute_dtype=jnp.float32):
    """x: [B, D_in]; w1: [D_in, H]; b1: [1, H]; w2: [H, D_out]; b2: [1, D_out]."""
    B, d_in = x.shape
    w_slab, b_slab, d_out, w2_row = pack_params(w1, b1, w2, b2, compute_dtype)

    # At least two grid steps once the batch is big enough to split, so the
    # "parallel" batch axis can actually use both TensorCores on v7x.
    min_tiles = 2 if B >= 16 else 1
    tb, n_tiles = _choose_batch_tile(B, block_rows, min_tiles)

    kernel = functools.partial(_mlp_kernel, d_in=d_in, w2_row=w2_row,
                               d_out=d_out, compute_dtype=compute_dtype)

    return pl.pallas_call(
        kernel,
        out_shape=jax.ShapeDtypeStruct((B, d_out), x.dtype),
        grid=(n_tiles,),
        in_specs=[
            # x is streamed & double-buffered over the batch grid; the ragged
            # last tile is handled by Pallas block masking (no host-side pad).
            pl.BlockSpec((tb, d_in), lambda i: (i, 0)),
            # one pinned weight slab + one tiny bias slab, each fetched once.
            pl.BlockSpec(w_slab.shape, lambda i: (0, 0)),
            pl.BlockSpec(b_slab.shape, lambda i: (0, 0)),
        ],
        # narrow [TB, d_out] output block: only useful bytes hit HBM, and the
        # result is returned directly (no post-kernel slice copy).
        out_specs=pl.BlockSpec((tb, d_out), lambda i: (i, 0)),
        compiler_params=pltpu.CompilerParams(
            dimension_semantics=("parallel",)),
    )(x, w_slab, b_slab)


def init_params(key, input_size, hidden_size, output_size, dtype=jnp.float32):
    """Deterministic init mimicking torch.nn.Linear's U(-1/sqrt(fan_in), ...)."""
    k1, k2, k3, k4 = jax.random.split(key, 4)
    bound1 = 1.0 / jnp.sqrt(jnp.float32(input_size))
    bound2 = 1.0 / jnp.sqrt(jnp.float32(hidden_size))
    w1 = jax.random.uniform(k1, (input_size, hidden_size), dtype, -bound1, bound1)
    b1 = jax.random.uniform(k2, (1, hidden_size), dtype, -bound1, bound1)
    w2 = jax.random.uniform(k3, (hidden_size, output_size), dtype, -bound2, bound2)
    b2 = jax.random.uniform(k4, (1, output_size), dtype, -bound2, bound2)
    return w1, b1, w2, b2


if __name__ == "__main__":
    key = jax.random.PRNGKey(0)
    kx, kp = jax.random.split(key)

    batch = 100            # intentionally ragged: exercises the masked last tile
    input_size = 32
    hidden_size = 10       # fixed by the module definition
    output_size = 4

    x = jax.random.normal(kx, (batch, input_size), dtype=jnp.float32)
    w1, b1, w2, b2 = init_params(kp, input_size, hidden_size, output_size)

    # Pure-JAX reference.
    ref = jnp.maximum(x @ w1 + b1, 0.0) @ w2 + b2

    # f32 path (small block_rows so the demo runs several pipelined grid steps).
    out = regression_model_forward(x, w1, b1, w2, b2, block_rows=32)
    out = jax.block_until_ready(out)
    assert out.shape == (batch, output_size)
    assert jnp.allclose(out, ref, atol=1e-4, rtol=1e-4)

    # bf16 compute path (halves weight/input vreg traffic), f32 accumulation.
    out_bf16 = regression_model_forward(x, w1, b1, w2, b2, block_rows=32,
                                        compute_dtype=jnp.bfloat16)
    out_bf16 = jax.block_until_ready(out_bf16)
    assert jnp.allclose(out_bf16, ref, atol=5e-2, rtol=5e-2)

    print("KERNEL_OK")
</pallas_src>

<mosaic_0001>
module attributes {stable_mosaic.version = 11 : i64} {
  func.func @_mlp_kernel(%arg0: i32, %arg1: memref<32x32xf32, #tpu.memory_space<vmem>>, %arg2: memref<160x128xf32, #tpu.memory_space<vmem>>, %arg3: memref<2x128xf32, #tpu.memory_space<vmem>>, %arg4: memref<32x4xf32, #tpu.memory_space<vmem>>) attributes {dimension_semantics = [#tpu.dimension_semantics<parallel>], iteration_bounds = array<i64: 4>, scalar_prefetch = 0 : i64, scratch_operands = 0 : i64, tpu.core_type = #tpu.core_type<tc>, window_params = [{transform_indices = @transform_0, window_bounds = array<i64: 32, 32>}, {pipeline_mode = #tpu.pipeline_mode<synchronous>, transform_indices = @transform_1, window_bounds = array<i64: 160, 128>}, {pipeline_mode = #tpu.pipeline_mode<synchronous>, transform_indices = @transform_2, window_bounds = array<i64: 2, 128>}, {transform_indices = @transform_3, window_bounds = array<i64: 32, 4>}]} {
    %c0 = arith.constant 0 : index
    %c0_0 = arith.constant 0 : index
    %0 = vector.load %arg1[%c0, %c0_0] : memref<32x32xf32, #tpu.memory_space<vmem>>, vector<32x32xf32>
    %c0_1 = arith.constant 0 : index
    %c0_2 = arith.constant 0 : index
    %1 = vector.load %arg2[%c0_1, %c0_2] : memref<160x128xf32, #tpu.memory_space<vmem>>, vector<32x128xf32>
    %c32 = arith.constant 32 : index
    %c0_3 = arith.constant 0 : index
    %2 = vector.load %arg2[%c32, %c0_3] : memref<160x128xf32, #tpu.memory_space<vmem>>, vector<128x128xf32>
    %c0_4 = arith.constant 0 : index
    %c0_5 = arith.constant 0 : index
    %3 = vector.load %arg3[%c0_4, %c0_5] : memref<2x128xf32, #tpu.memory_space<vmem>>, vector<1x128xf32>
    %c1 = arith.constant 1 : index
    %c0_6 = arith.constant 0 : index
    %4 = vector.load %arg3[%c1, %c0_6] : memref<2x128xf32, #tpu.memory_space<vmem>>, vector<1x128xf32>
    %cst = arith.constant dense<0.000000e+00> : vector<32x128xf32>
    %5 = tpu.matmul %0, %1, %cst {dimension_numbers = #tpu.dot_dimension_numbers<[1], [0], [0], [1], [0, 0, 1, 1], [], []>} : vector<32x32xf32>, vector<32x128xf32>, vector<32x128xf32> -> vector<32x128xf32>
    %6 = vector.broadcast %3 : vector<1x128xf32> to vector<32x128xf32>
    %7 = arith.addf %5, %6 : vector<32x128xf32>
    %cst_7 = arith.constant 0.000000e+00 : f32
    %8 = vector.broadcast %cst_7 : f32 to vector<32x128xf32>
    %9 = arith.maximumf %7, %8 : vector<32x128xf32>
    %cst_8 = arith.constant dense<0.000000e+00> : vector<32x128xf32>
    %10 = tpu.matmul %9, %2, %cst_8 {dimension_numbers = #tpu.dot_dimension_numbers<[1], [0], [0], [1], [0, 0, 1, 1], [], []>} : vector<32x128xf32>, vector<128x128xf32>, vector<32x128xf32> -> vector<32x128xf32>
    %11 = vector.broadcast %4 : vector<1x128xf32> to vector<32x128xf32>
    %12 = arith.addf %10, %11 : vector<32x128xf32>
    %13 = vector.extract_strided_slice %12 {offsets = [0, 0], sizes = [32, 4], strides = [1, 1]} : vector<32x128xf32> to vector<32x4xf32>
    %c0_9 = arith.constant 0 : index
    %c0_10 = arith.constant 0 : index
    %14 = vector.load %arg4[%c0_9, %c0_10] : memref<32x4xf32, #tpu.memory_space<vmem>>, vector<32x4xf32>
    tpu.vector_store %arg4[%c0_9, %c0_10], %13 {strides = array<i32>} : memref<32x4xf32, #tpu.memory_space<vmem>>, vector<32x4xf32>,
    return
  }
  func.func @transform_0(%arg0: i32) -> (i32, i32) {
    %c0_i32 = arith.constant 0 : i32
    %c0_i32_0 = arith.constant 0 : i32
    return %arg0, %c0_i32 : i32, i32
  }
  func.func @transform_1(%arg0: i32) -> (i32, i32) {
    %c0_i32 = arith.constant 0 : i32
    %c0_i32_0 = arith.constant 0 : i32
    %c0_i32_1 = arith.constant 0 : i32
    return %c0_i32, %c0_i32_0 : i32, i32
  }
  func.func @transform_2(%arg0: i32) -> (i32, i32) {
    %c0_i32 = arith.constant 0 : i32
    %c0_i32_0 = arith.constant 0 : i32
    %c0_i32_1 = arith.constant 0 : i32
    return %c0_i32, %c0_i32_0 : i32, i32
  }
  func.func @transform_3(%arg0: i32) -> (i32, i32) {
    %c0_i32 = arith.constant 0 : i32
    %c0_i32_0 = arith.constant 0 : i32
    return %arg0, %c0_i32 : i32, i32
  }
}

</mosaic_0001>

<bundles_post_ra>
// kernel: tpu_custom_call.1
= control target key start
LH: loop header
LB: loop body
LE: loop exit
PB: predicated region body
PF: predicated region fallthrough
CT: control target
= control target key end

     0   :  { %8 = vsyncpa [#allocation3], 0  ;;  %s870_s12 = smov 0   ;;  %s872_s13 = smov 0   ;;  %s996_s0 = inlined_call_operand.vmem [shape: f32[100,32], index: 0, kind: input, shape index: {}]   ;;  %s997_s1 = inlined_call_operand.hbm [shape: f32[160,128], index: 1, kind: input, shape index: {}]   ;;  %s998_s2 = inlined_call_operand.vmem [shape: f32[2,128], index: 2, kind: input, shape index: {}]   ;;  %s999_s3 = inlined_call_operand.vmem [shape: f32[100,4], index: 3, kind: output, shape index: {}]  }
   0x1   :  { %s874_s14 = smov 0  }
   0x2 LB: > { %s883_s15 = sadd.s32 4294967295, %s813_s14   ;;  %s885_s16 = sadd.s32 1, %s813_s14   ;;  %s813_s14 = sphi %s874_s14, %s1006_s14   ;;  %s809_s13 = sphi %s872_s13, %s1005_s13   ;;  %s805_s12 = sphi %s870_s12, %s1004_s12  }
   0x3   : > { %s86_s17 = ssub.s32 %s813_s14, %s885_s16  ;;  %s89_s18 = sadd.s32 1, %s809_s13 }
   0x4   : > { %p87_p0 = scmp.eq.s32.totalorder %s86_s17, 0  ;;  %p99_p1 = scmp.ne.s32.totalorder %s809_s13, %s805_s12 }
   0x5   : > { %p100_p2 = scmp.eq.s32.totalorder %s883_s15, 3  ;;  %p558_p3 = scmp.ge.s32.totalorder %s813_s14, 1 }
   0x6   : > { %s893_s19 = scalar_select %p87_p0, %s809_s13, %s89_s18  }
   0x7   : > { %p895_p4 = por %p100_p2, %p99_p1  ;;  %p113_p5 = scmp.lt.s32.totalorder %s813_s14, 5 }
   0x8   : > { %p630_p6 = scmp.eq.s32.totalorder %s883_s15, 0  ;;  %s124_s23 = sshll.u32 %s997_s1, 4  ;;  %s125_s23 = int_to_ptr.hbm [resolvable:$true] %s124_s23 }
   0x9   : > { %p114_p7 = pnand %p558_p3, %p113_p5  ;;  %s847_s24 = smov [#allocation2]  }
   0xa   : > { %s126_s25 = sshll.u32 %s847_s24, 4  ;;  %s848_s26 = smov 128   ;;  %s127_s25 = int_to_ptr.vmem [resolvable:$true] %s126_s25 }
   0xb   : > { %p626_p8 = pneg %p114_p7  ;;  %s849_s27 = smov 8  }
   0xc   : > { %162 = sbr.rel (%p114_p7) target bundleno = 354 (0x162), region = 32 }
   0xd   : > { %p627_p9 = pnand %p630_p6, %p626_p8 }
   0xf   : > { %629 = dma.hbm_to_vmem [thread:$0]  (!%p627_p9), %s125_s23, 2560, %s127_s25, [#allocation3], %s848_s26, %s848_s26, %s849_s27  }
  0x11   : > { %800 = dma.done.wait (%p630_p6), [#allocation3], 2560  }
  0x12   : > { %802 = vsyncadd (%p630_p6), [#allocation3], 4294964736  ;;  %s910_s28 = sshll.u32 %s883_s15, 2  ;;  %v216_v0 = vld [vmem:[#allocation2 + $0x18] sm:$0xff]  ;;  %v215_v1 = vld [vmem:[#allocation2 + $0x10] sm:$0xff]  ;;  %vm236_vm0 = vcmask 261120  }
  0x13   : > { %p195_p10 = scmp.lt.s32.totalorder %s910_s28, 12  ;;  %261 = vmatpush.msra.mxu0 %v216_v0  ;;  %v214_v2 = vld [vmem:[#allocation2 + $0x8] sm:$0xff]  ;;  %v232_v3 = vld [vmem:[#allocation2 + $0x98] sm:$0xff]  ;;  %v231_v4 = vld [vmem:[#allocation2 + $0x90] sm:$0xff]  ;;  %s187_s9 = sand.u32 1, %s805_s12   ;;  %vm312_vm1 = vcmask 31744  }
  0x14   : > { %283 = vmatpush.msra.mxu1 %v232_v3  ;;  %v213_v5 = vld [vmem:[#allocation2] sm:$0xff]  ;;  %v230_v6 = vld [vmem:[#allocation2 + $0x88] sm:$0xff]  ;;  %590 = vmatpush.msra.mxu2 %v232_v3  ;;  %v228_v9 = vld [vmem:[#allocation2 + $0x78] sm:$0xff]  ;;  %s563_s10 = sshll.u32 %s187_s9, 5  ;;  %s325_s12 = ssub.s32 (%p895_p4), 13, %s910_s28 }
  0x15   : > { %s196_s29 = scalar_select %p195_p10, %s910_s28, 12  ;;  %262 = vmatpush.msra.mxu0 %v215_v1  ;;  %591 = vmatpush.msra.mxu3 %v232_v3  ;;  %v229_v8 = vld [vmem:[#allocation2 + $0x80] sm:$0xff]  ;;  %v227_v10 = vld [vmem:[#allocation2 + $0x70] sm:$0xff]  ;;  %v226_v11 = vld [vmem:[#allocation2 + $0x68] sm:$0xff] }
  0x16   : > { %284 = vmatpush.msra.mxu1 %v231_v4  ;;  %592 = vmatpush.msra.mxu2 %v231_v4  ;;  %v225_v13 = vld [vmem:[#allocation2 + $0x60] sm:$0xff]  ;;  %v224_v14 = vld [vmem:[#allocation2 + $0x58] sm:$0xff]  ;;  %v223_v15 = vld [vmem:[#allocation2 + $0x50] sm:$0xff]  ;;  %s934_s17 = scalar_lea.vmem [#allocation4], %s563_s10   ;;  %s587_s18 = sshll.u32 (%p895_p4), %s883_s15, 5 }
  0x17   : > { %s565_s30 = sshll.u32 %s196_s29, 3  ;;  %263 = vmatpush.msra.mxu0 %v214_v2  ;;  %593 = vmatpush.msra.mxu3 %v231_v4  ;;  %v222_v16 = vld [vmem:[#allocation2 + $0x48] sm:$0xff]  ;;  %v221_v18 = vld [vmem:[#allocation2 + $0x40] sm:$0xff]  ;;  %v220_v19 = vld [vmem:[#allocation2 + $0x38] sm:$0xff]  ;;  %p326_p11 = scmp.lt.s32.totalorder (%p895_p4), %s325_s12, 4 }
  0x18   : > { %s917_s6 = scalar_lea.vmem %s996_s0, %s565_s30  ;;  %285 = vmatpush.msra.mxu1 %v230_v6  ;;  %594 = vmatpush.msra.mxu2 %v230_v6  ;;  %v219_v21 = vld [vmem:[#allocation2 + $0x30] sm:$0xff]  ;;  %v218_v22 = vld [vmem:[#allocation2 + $0x28] sm:$0xff]  ;;  %v217_v23 = vld [vmem:[#allocation2 + $0x20] sm:$0xff]  ;;  %s947_s23 = scalar_lea.vmem (%p895_p4), %s999_s3, %s587_s18  }
  0x19   : > { %v209_v7 = vld [vmem:[%s917_s6] sm:$0xff]  ;;  %264 = vmatpush.msra.mxu0 %v213_v5  ;;  %595 = vmatpush.msra.mxu3 %v230_v6  ;;  %v210_v12 = vld [vmem:[%s917_s6 + $0x8] sm:$0xff]  ;;  %v211_v17 = vld [vmem:[%s917_s6 + $0x10] sm:$0xff] }
  0x1a   : > { %566 = vmatmul.msk.f32.vlgmr.msra.gmra.mxu0 %vm236_vm0, %v209_v7  ;;  %286 = vmatpush.msra.mxu1 %v229_v8  ;;  %v212_v20 = vld [vmem:[%s917_s6 + $0x18] sm:$0xff]  ;;  %v723_v24 = vld [vmem:[%s998_s2] ss:$0 sm:$0xff]  ;;  %v724_v37 = vld [vmem:[%s998_s2 + $0x1] ss:$0 sm:$0xff] }
  0x1b   : > { %596 = vmatpush.msra.mxu2 %v229_v8  ;;  %597 = vmatpush.msra.mxu3 %v229_v8 }
  0x1c   : > { %287 = vmatpush.msra.mxu1 %v228_v9 }
  0x1d   : > { %598 = vmatpush.msra.mxu2 %v228_v9  ;;  %599 = vmatpush.msra.mxu3 %v228_v9 }
  0x1e   : > { %288 = vmatpush.msra.mxu1 %v227_v10 }
  0x1f   : > { %600 = vmatpush.msra.mxu2 %v227_v10  ;;  %601 = vmatpush.msra.mxu3 %v227_v10 }
  0x20   : > { %289 = vmatpush.msra.mxu1 %v226_v11 }
  0x21   : > { %602 = vmatpush.msra.mxu2 %v226_v11  ;;  %603 = vmatpush.msra.mxu3 %v226_v11 }
  0x22   : > { %567 = vmatmul.msk.f32.gmra.mxu0 %vm236_vm0, %v210_v12  ;;  %290 = vmatpush.msra.mxu1 %v225_v13 }
  0x23   : > { %604 = vmatpush.msra.mxu2 %v225_v13  ;;  %605 = vmatpush.msra.mxu3 %v225_v13 }
  0x24   : > { %291 = vmatpush.msra.mxu1 %v224_v14 }
  0x25   : > { %606 = vmatpush.msra.mxu2 %v224_v14  ;;  %607 = vmatpush.msra.mxu3 %v224_v14 }
  0x26   : > { %292 = vmatpush.msra.mxu1 %v223_v15 }
  0x27   : > { %608 = vmatpush.msra.mxu2 %v223_v15  ;;  %609 = vmatpush.msra.mxu3 %v223_v15 }
  0x28   : > { %293 = vmatpush.msra.mxu1 %v222_v16 }
  0x29   : > { %610 = vmatpush.msra.mxu2 %v222_v16  ;;  %611 = vmatpush.msra.mxu3 %v222_v16 }
  0x2a   : > { %568 = vmatmul.msk.f32.gmra.mxu0 %vm236_vm0, %v211_v17  ;;  %294 = vmatpush.msra.mxu1 %v221_v18 }
  0x2b   : > { %612 = vmatpush.msra.mxu2 %v221_v18  ;;  %613 = vmatpush.msra.mxu3 %v221_v18 }
  0x2c   : > { %295 = vmatpush.msra.mxu1 %v220_v19 }
  0x2d   : > { %614 = vmatpush.msra.mxu2 %v220_v19  ;;  %615 = vmatpush.msra.mxu3 %v220_v19 }
  0x2e   : > { %296 = vmatpush.msra.mxu1 %v219_v21 }
  0x2f   : > { %616 = vmatpush.msra.mxu2 %v219_v21  ;;  %617 = vmatpush.msra.mxu3 %v219_v21 }
  0x30   : > { %297 = vmatpush.msra.mxu1 %v218_v22 }
  0x31   : > { %618 = vmatpush.msra.mxu2 %v218_v22  ;;  %619 = vmatpush.msra.mxu3 %v218_v22 }
  0x32   : > { %569 = vmatmul.msk.f32.gmra.mxu0 %vm236_vm0, %v212_v20  ;;  %298 = vmatpush.msra.mxu1 %v217_v23 }
  0x33   : > { %620 = vmatpush.msra.mxu2 %v217_v23  ;;  %621 = vmatpush.msra.mxu3 %v217_v23 }
  0x97   : > { %v266_v25 = vpop.f32.mrf.mxu0 }
  0x98   : > { %v267_v26 = vadd.f32 %v723_v24, %v266_v25 }
  0x9a   : > { %v278_v27 = vmax.f32 %v267_v26, 0.0 }
  0x9c   : > { %299 = vmatmul.f32.vlgmr.msra.gmra.mxu1 %v278_v27 }
  0x9f   : > { %v269_v28 = vpop.f32.mrf.mxu0 }
  0xa0   : > { %v270_v29 = vadd.f32 %v723_v24, %v269_v28 }
  0xa2   : > { %v279_v30 = vmax.f32 %v270_v29, 0.0 }
  0xa4   : > { %302 = vmatmul.f32.vlgmr.msra.gmra.mxu2 %v279_v30 }
  0xa7   : > { %v272_v31 = vpop.f32.mrf.mxu0 }
  0xa8   : > { %v273_v32 = vadd.f32 %v723_v24, %v272_v31 }
  0xaa   : > { %v280_v33 = vmax.f32 %v273_v32, 0.0 }
  0xac   : > { %305 = vmatmul.f32.vlgmr.msra.gmra.mxu3 %v280_v33 }
  0xaf   : > { %v275_v34 = vpop.f32.mrf.mxu0 }
  0xb0   : > { %v276_v35 = vadd.f32 %v723_v24, %v275_v34 }
  0xb2   : > { %v281_v36 = vmax.f32 %v276_v35, 0.0 }
  0xb4   : > { %308 = vmatmul.f32.gmra.mxu3 %v281_v36 }
 0x119   : > { %v300_v38 = vpop.f32.mrf.mxu1 }
 0x11a   : > { %v301_v39 = vadd.f32 %v724_v37, %v300_v38 }
 0x11c   : > { %313 = vst.msk [vmem:[%s934_s17] sm:$0xff] %vm312_vm1, %v301_v39 }
 0x127   : > { %v303_v40 = vpop.f32.mrf.mxu2 }
 0x128   : > { %v304_v41 = vadd.f32 %v724_v37, %v303_v40 }
 0x12a   : > { %314 = vst.msk [vmem:[%s934_s17 + $0x8] sm:$0xff] %vm312_vm1, %v304_v41 }
 0x12f   : > { %v306_v42 = vpop.f32.mrf.mxu3 }
 0x130   : > { %v307_v43 = vadd.f32 %v724_v37, %v306_v42 }
 0x132   : > { %315 = vst.msk [vmem:[%s934_s17 + $0x10] sm:$0xff] %vm312_vm1, %v307_v43 }
 0x136   : > { %323 = sbr.rel (!%p895_p4) target bundleno = 354 (0x162), region = 40 }
 0x137   : > { %v309_v44 = vpop.f32.mrf.mxu3 }
 0x138   : > { %v310_v45 = vadd.f32 %v724_v37, %v309_v44 }
 0x13a   : > { %316 = vst.msk [vmem:[%s934_s17 + $0x18] sm:$0xff] %vm312_vm1, %v310_v45 }
 0x13b   : > { %s1008_s12 = smov (!%p326_p11, %s325_s12), 4 }
 0x13c   : > { %s572_s24 = sshll.u32 %s1008_s12, 3 }
 0x13d   : > { %p575_p12 = scmp.eq.s32.totalorder %s572_s24, 0 }
 0x13e   : > { %s953_s25 = sshrl.u32 (!%p575_p12), %s1008_s12, 2 }
 0x13f   : > { %334 = sbr.rel (%p575_p12) target bundleno = 354 (0x162), region = 44  ;;  %p576_p13 = scmp.le.s32.totalorder (!%p575_p12), %s953_s25, 0 }
 0x144   : > { %504 = sbr.rel (%p576_p13) target bundleno = 337 (0x151), region = 121  ;;  %s1001_s15 = smov (!%p576_p13), %s947_s23 }
 0x145   : > { %s1002_s20 = smov (!%p576_p13), %s934_s17  ;;  %s962_s26 = smov (!%p576_p13), 0  }
 0x146   : > { %s827_s27 = smov (!%p576_p13), 0  }
 0x149 LB: >> { %v403_v46 = vld [vmem:[%s821_s20] sm:$0xff]  ;;  %v405_v47 = vld [vmem:[%s821_s20 + $0x8] sm:$0xff]  ;;  %v407_v48 = vld [vmem:[%s821_s20 + $0x10] sm:$0xff]  ;;  %s411_s28 = sadd.s32 1, %s825_s26  ;;  %s397_s27 = sadd.s32 1, %s829_s27   ;;  %s829_s27 = sphi %s827_s27, %s397_s27   ;;  %s825_s26 = sphi %s962_s26, %s1003_s26   ;;  %s821_s20 = sphi %s1002_s20, %s416_s20   ;;  %s817_s15 = sphi %s1001_s15, %s417_s15  }
 0x14a   : >> { %404 = vst [vmem:[%s817_s15] sm:$0xff] %v403_v46  ;;  %v409_v49 = vld [vmem:[%s821_s20 + $0x18] sm:$0xff]  ;;  %p412_p0 = scmp.ge.s32.totalorder %s411_s28, %s953_s25  ;;  %p396_p1 = scmp.ge.s32.totalorder %s397_s27, %s953_s25 }
 0x14b   : >> { %406 = vst [vmem:[%s817_s15 + $0x8] sm:$0xff] %v405_v47 }
 0x14c   : >> { %408 = vst [vmem:[%s817_s15 + $0x10] sm:$0xff] %v407_v48  ;;  %s1010_s28 = smov (%p412_p0, %s411_s28), 0  ;;  %399 = sbr.rel (!%p396_p1) target bundleno = 329 (0x149), region = 127 }
 0x14d   : >> { %410 = vst [vmem:[%s817_s15 + $0x18] sm:$0xff] %v409_v49  ;;  %s577_s29 = sshll.u32 %s1010_s28, 5  ;;  %s1003_s26 = smov %s1010_s28 }
 0x14e   : >> { %s416_s20 = scalar_lea.vmem %s934_s17, %s577_s29 [#allocation4]   ;;  %s417_s15 = scalar_lea.vmem %s947_s23, %s577_s29  }
 0x151 PF: > { %s978_s30 = sand.u32 3, %s1008_s12   ;;  %s588_s4 = sshll.u32 %s953_s25, 5 }
 0x152   : > { %s422_s5 = scalar_lea.vmem %s934_s17, %s588_s4 [#allocation4]   ;;  %s424_s6 = scalar_lea.vmem %s947_s23, %s588_s4  }
 0x153   : > { %p582_p2 = scmp.le.s32.totalorder %s978_s30, 0 }
 0x154   : > { %s831_s7 = smov (!%p582_p2), %s424_s6   ;;  %s835_s8 = smov (!%p582_p2), %s422_s5  }
 0x155   : > { %518 = sbr.rel (%p582_p2) target bundleno = 354 (0x162), region = 132  ;;  %s839_s9 = smov (!%p582_p2), 0  }
 0x156   : > { %s843_s10 = smov (!%p582_p2), 0  }
 0x15a LB: >> { %v434_v50 = vld [vmem:[%s837_s8] sm:$0xff]  ;;  %s436_s11 = sadd.s32 1, %s841_s9  ;;  %s428_s10 = sadd.s32 1, %s845_s10   ;;  %s845_s10 = sphi %s843_s10, %s428_s10   ;;  %s841_s9 = sphi %s839_s9, %s840_s9   ;;  %s837_s8 = sphi %s835_s8, %s441_s8   ;;  %s833_s7 = sphi %s831_s7, %s442_s7  }
 0x15b   : >> { %435 = vst [vmem:[%s833_s7] sm:$0xff] %v434_v50  ;;  %p437_p3 = scmp.ge.s32.totalorder %s436_s11, %s978_s30  ;;  %p427_p4 = scmp.ge.s32.totalorder %s428_s10, %s978_s30 }
 0x15d   : >> { %s1012_s11 = smov (%p437_p3, %s436_s11), 0  ;;  %430 = sbr.rel (!%p427_p4) target bundleno = 346 (0x15a), region = 138 }
 0x15e   : >> { %s583_s14 = sshll.u32 %s1012_s11, 3  ;;  %s840_s9 = smov %s1012_s11  }
 0x15f   : >> { %s441_s8 = scalar_lea.vmem %s422_s5, %s583_s14 [#allocation4]   ;;  %s442_s7 = scalar_lea.vmem %s424_s6, %s583_s14  }
 0x162 PF: > { %p11_p5 = scmp.ge.s32.totalorder %s885_s16, 6   ;;  %s1004_s12 = smov %s809_s13 }
 0x163   : > { %s1005_s13 = smov %s893_s19  ;;  %s1006_s14 = smov %s885_s16 }
 0x164   :  { %13 = sbr.rel (!%p11_p5) target bundleno = 2 (0x2), region = 149 }
 0x169   :  { %458 = vsyncpa [#allocation3], 1 }
 0x16a   :  { %460 = vsyncpa [#allocation3 + $0x1], 1 }

</bundles_post_ra>
